<compile_context>
chip_gen: v7x
topology: tpu7x:2x2x1
jax: 0.10.0
libtpu: 0.0.40
codegen_flags: <defaults>
</compile_context>

<pallas_src>
import jax
import jax.numpy as jnp
from jax import lax
from jax.experimental import pallas as pl
from jax.experimental.pallas import tpu as pltpu


# --------------------------- pass 1: per-sample statistics ---------------------------
def _stats_kernel(x_ref, sum_ref, sumsq_ref):
    # Spatial axis (grid dim 1) is the accumulator axis; re-init whenever a new
    # batch block starts its spatial loop.
    @pl.when(pl.program_id(1) == 0)
    def _():
        sum_ref[...] = jnp.zeros_like(sum_ref)
        sumsq_ref[...] = jnp.zeros_like(sumsq_ref)

    x = x_ref[...].astype(jnp.float32)                      # (Bt, C, tN)
    sum_ref[...] += jnp.sum(x, axis=2, keepdims=True)       # (Bt, C, 1)
    sumsq_ref[...] += jnp.sum(x * x, axis=2, keepdims=True)


# ------------------- pass 2: streaming normalize + conditional gain/bias ------------------
def _cbn_kernel(x_ref, scale_ref, shift_ref, out_ref):
    x = x_ref[...].astype(jnp.float32)                      # (Bt, C, tN)
    out_ref[...] = (x * scale_ref[...] + shift_ref[...]).astype(out_ref.dtype)


# ------------------------------ tiling helpers ------------------------------
def _round_up(v, m):
    return ((v + m - 1) // m) * m


def _vmem_capacity_bytes():
    try:
        cap = getattr(pltpu.get_tpu_info(), "vmem_capacity_bytes", None)
        if cap:
            return int(cap)
    except Exception:
        pass
    return 128 * 1024 * 1024


def _pick_spatial_tile(n, c, itemsize, budget_bytes):
    """Lane-aligned (multiple of 128) spatial tile and padded N.

    Never requests more than `budget_bytes` per (1, C, tN) slab, so a block can
    never exceed VMEM regardless of N (fixes the old ragged-N fallback).
    """
    n128 = _round_up(n, 128)
    max_lanes = max(128, (budget_bytes // max(1, c * itemsize)) // 128 * 128)
    cap = min(n128, max_lanes)
    # Prefer a divisor of the 128-rounded N (no extra padding)…
    best_div = max(d for d in range(128, cap + 1, 128) if n128 % d == 0)
    if 2 * best_div >= cap:
        return best_div, n128
    # …otherwise pad a little further and use a full-budget tile.
    tn = cap
    return tn, _round_up(n, tn)


def _pick_batch_tile(b, c, tn, itemsize, budget_bytes):
    """Largest divisor of B such that the (Bt, C, tN) block fits the budget."""
    per_sample = c * tn * itemsize
    max_bt = max(1, budget_bytes // max(1, per_sample))
    bt = 1
    for d in range(1, b + 1):
        if b % d == 0 and d <= max_bt:
            bt = d
    return bt


# ------------------------------ forward wrapper ------------------------------
def conditional_batchnorm2d_forward(x, y, params, *, eps=1e-4):
    """x: (B, C, H, W) NCHW, y: (B,) int class ids. Training-mode CBN forward."""
    B, C, H, W = x.shape
    N = H * W
    itemsize = x.dtype.itemsize

    # Generation-aware budgets: v7x has 64 MiB VMEM/TC, v5e/v6e have 128 MiB.
    vmem_cap = _vmem_capacity_bytes()
    if vmem_cap <= 64 * 1024 * 1024:
        block_budget = 4 * 1024 * 1024
        limit_cap = 48 * 1024 * 1024
    else:
        block_budget = 8 * 1024 * 1024
        limit_cap = 96 * 1024 * 1024

    tN, N_pad = _pick_spatial_tile(N, C, itemsize, block_budget)
    Bt = _pick_batch_tile(B, C, tN, itemsize, block_budget)
    nN = N_pad // tN
    nB = B // Bt

    x_flat = x.reshape(B, C, N)                       # contiguous reshape only
    if N_pad != N:
        # Zero padding leaves sum / sum-of-squares unchanged; count uses true N.
        x_flat = jnp.pad(x_flat, ((0, 0), (0, 0), (0, N_pad - N)))

    block_bytes = Bt * C * tN * itemsize
    vmem_limit = int(min(limit_cap, max(16 * 1024 * 1024,
                                        4 * block_bytes + (8 * 1024 * 1024))))

    # ------------------------------ pass 1 ------------------------------
    psum, psumsq = pl.pallas_call(
        _stats_kernel,
        out_shape=(jax.ShapeDtypeStruct((B, C, 1), jnp.float32),
                   jax.ShapeDtypeStruct((B, C, 1), jnp.float32)),
        grid_spec=pltpu.PrefetchScalarGridSpec(
            num_scalar_prefetch=0,
            grid=(nB, nN),
            in_specs=[pl.BlockSpec((Bt, C, tN), lambda b, n: (b, 0, n))],
            out_specs=(pl.BlockSpec((Bt, C, 1), lambda b, n: (b, 0, 0)),
                       pl.BlockSpec((Bt, C, 1), lambda b, n: (b, 0, 0)))),
        compiler_params=pltpu.CompilerParams(
            dimension_semantics=("parallel", "arbitrary"),
            vmem_limit_bytes=vmem_limit),
        cost_estimate=pl.CostEstimate(
            flops=3 * B * C * N_pad, transcendentals=0,
            bytes_accessed=B * C * N_pad * itemsize + 2 * B * C * 4),
    )(x_flat)

    # -------- tiny XLA glue: combine partials, per-sample scale / shift --------
    count = float(B * N)
    mean = jnp.sum(psum[:, :, 0], axis=0) / count                     # (C,)
    var = jnp.sum(psumsq[:, :, 0], axis=0) / count - mean * mean      # biased
    var = jnp.maximum(var, 0.0)                                       # guard cancellation
    inv_std = lax.rsqrt(var + eps)                                    # (C,)

    y32 = y.astype(jnp.int32)
    gain = 1.0 + params["embed0"][y32].astype(jnp.float32)            # (B, C)
    bias = params["embed1"][y32].astype(jnp.float32)                  # (B, C)
    scale = gain * inv_std[None, :]                                   # (B, C)
    shift = bias - mean[None, :] * scale
    scale3 = scale[:, :, None]                                        # (B, C, 1)
    shift3 = shift[:, :, None]

    # ------------------------------ pass 2 ------------------------------
    out_flat = pl.pallas_call(
        _cbn_kernel,
        out_shape=jax.ShapeDtypeStruct((B, C, N_pad), x.dtype),
        grid_spec=pltpu.PrefetchScalarGridSpec(
            num_scalar_prefetch=0,
            grid=(nB, nN),
            in_specs=[
                pl.BlockSpec((Bt, C, tN), lambda b, n: (b, 0, n)),    # x
                pl.BlockSpec((Bt, C, 1), lambda b, n: (b, 0, 0)),     # scale
                pl.BlockSpec((Bt, C, 1), lambda b, n: (b, 0, 0)),     # shift
            ],
            out_specs=pl.BlockSpec((Bt, C, tN), lambda b, n: (b, 0, n))),
        compiler_params=pltpu.CompilerParams(
            dimension_semantics=("parallel", "parallel"),
            vmem_limit_bytes=vmem_limit),
        cost_estimate=pl.CostEstimate(
            flops=2 * B * C * N_pad, transcendentals=0,
            bytes_accessed=2 * B * C * N_pad * itemsize + 2 * B * C * 4),
    )(x_flat, scale3, shift3)

    if N_pad != N:
        out_flat = out_flat[:, :, :N]
    return out_flat.reshape(B, C, H, W)


# ---------------- pure-JAX reference (for correctness check) ----------------
def conditional_batchnorm2d_reference(x, y, params, *, eps=1e-4):
    mean = jnp.mean(x, axis=(0, 2, 3), keepdims=True)
    var = jnp.var(x, axis=(0, 2, 3), keepdims=True)        # biased (torch train)
    xhat = (x - mean) / jnp.sqrt(var + eps)
    gain = 1.0 + params["embed0"][y][:, :, None, None]
    bias = params["embed1"][y][:, :, None, None]
    return xhat * gain + bias


def init_params(key, num_classes, C):
    k0, k1 = jax.random.split(key)
    return {
        # nn.Embedding default init: N(0, 1)
        "embed0": jax.random.normal(k0, (num_classes, C), jnp.float32),
        "embed1": jax.random.normal(k1, (num_classes, C), jnp.float32),
    }


if __name__ == "__main__":
    B, C, H, W = 2, 4, 16, 16
    num_classes = 10
    key = jax.random.PRNGKey(0)
    kx, ky, kp = jax.random.split(key, 3)
    x = jax.random.normal(kx, (B, C, H, W), jnp.float32)
    y = jax.random.randint(ky, (B,), 0, num_classes)
    params = init_params(kp, num_classes, C)

    out = jax.block_until_ready(conditional_batchnorm2d_forward(x, y, params))
    ref = conditional_batchnorm2d_reference(x, y, params)
    assert out.shape == ref.shape
    max_err = float(jnp.max(jnp.abs(out - ref)))
    assert jnp.allclose(out, ref, atol=1e-4, rtol=1e-4), max_err

    print("KERNEL_OK")
</pallas_src>

<mosaic_0001>
module attributes {stable_mosaic.version = 11 : i64} {
  func.func @_stats_kernel(%arg0: i32, %arg1: i32, %arg2: memref<2x4x256xf32, #tpu.memory_space<vmem>>, %arg3: memref<2x4x1xf32, #tpu.memory_space<vmem>>, %arg4: memref<2x4x1xf32, #tpu.memory_space<vmem>>) attributes {dimension_semantics = [#tpu.dimension_semantics<parallel>, #tpu.dimension_semantics<arbitrary>], iteration_bounds = array<i64: 1, 1>, scalar_prefetch = 0 : i64, scratch_operands = 0 : i64, tpu.core_type = #tpu.core_type<tc>, window_params = [{transform_indices = @transform_0, window_bounds = array<i64: 2, 4, 256>}, {transform_indices = @transform_1, window_bounds = array<i64: 2, 4, 1>}, {transform_indices = @transform_2, window_bounds = array<i64: 2, 4, 1>}]} {
    %c0_i32 = arith.constant 0 : i32
    %0 = arith.cmpi eq, %arg1, %c0_i32 : i32
    %1 = arith.extui %0 : i1 to i32
    %c0_i32_0 = arith.constant 0 : i32
    %2 = arith.cmpi ne, %1, %c0_i32_0 : i32
    scf.if %2 {
      %cst_16 = arith.constant 0.000000e+00 : f32
      %15 = vector.broadcast %cst_16 : f32 to vector<2x4x1xf32>
      %c0_17 = arith.constant 0 : index
      %c0_18 = arith.constant 0 : index
      %c0_19 = arith.constant 0 : index
      %16 = vector.load %arg3[%c0_17, %c0_18, %c0_19] : memref<2x4x1xf32, #tpu.memory_space<vmem>>, vector<2x4x1xf32>
      tpu.vector_store %arg3[%c0_17, %c0_18, %c0_19], %15 {strides = array<i32>} : memref<2x4x1xf32, #tpu.memory_space<vmem>>, vector<2x4x1xf32>,
      %cst_20 = arith.constant 0.000000e+00 : f32
      %17 = vector.broadcast %cst_20 : f32 to vector<2x4x1xf32>
      %c0_21 = arith.constant 0 : index
      %c0_22 = arith.constant 0 : index
      %c0_23 = arith.constant 0 : index
      %18 = vector.load %arg4[%c0_21, %c0_22, %c0_23] : memref<2x4x1xf32, #tpu.memory_space<vmem>>, vector<2x4x1xf32>
      tpu.vector_store %arg4[%c0_21, %c0_22, %c0_23], %17 {strides = array<i32>} : memref<2x4x1xf32, #tpu.memory_space<vmem>>, vector<2x4x1xf32>,
    } else {
    }
    %c0 = arith.constant 0 : index
    %c0_1 = arith.constant 0 : index
    %c0_2 = arith.constant 0 : index
    %3 = vector.load %arg2[%c0, %c0_1, %c0_2] : memref<2x4x256xf32, #tpu.memory_space<vmem>>, vector<2x4x256xf32>
    %c0_3 = arith.constant 0 : index
    %c0_4 = arith.constant 0 : index
    %c0_5 = arith.constant 0 : index
    %4 = vector.load %arg3[%c0_3, %c0_4, %c0_5] : memref<2x4x1xf32, #tpu.memory_space<vmem>>, vector<2x4x1xf32>
    %cst = arith.constant dense<0.000000e+00> : vector<2x4xf32>
    %5 = vector.multi_reduction <add>, %3, %cst [2] : vector<2x4x256xf32> to vector<2x4xf32>
    %6 = vector.shape_cast %5 : vector<2x4xf32> to vector<2x4x1xf32>
    %7 = arith.addf %4, %6 : vector<2x4x1xf32>
    %c0_6 = arith.constant 0 : index
    %c0_7 = arith.constant 0 : index
    %c0_8 = arith.constant 0 : index
    %8 = vector.load %arg3[%c0_6, %c0_7, %c0_8] : memref<2x4x1xf32, #tpu.memory_space<vmem>>, vector<2x4x1xf32>
    tpu.vector_store %arg3[%c0_6, %c0_7, %c0_8], %7 {strides = array<i32>} : memref<2x4x1xf32, #tpu.memory_space<vmem>>, vector<2x4x1xf32>,
    %c0_9 = arith.constant 0 : index
    %c0_10 = arith.constant 0 : index
    %c0_11 = arith.constant 0 : index
    %9 = vector.load %arg4[%c0_9, %c0_10, %c0_11] : memref<2x4x1xf32, #tpu.memory_space<vmem>>, vector<2x4x1xf32>
    %10 = arith.mulf %3, %3 : vector<2x4x256xf32>
    %cst_12 = arith.constant dense<0.000000e+00> : vector<2x4xf32>
    %11 = vector.multi_reduction <add>, %10, %cst_12 [2] : vector<2x4x256xf32> to vector<2x4xf32>
    %12 = vector.shape_cast %11 : vector<2x4xf32> to vector<2x4x1xf32>
    %13 = arith.addf %9, %12 : vector<2x4x1xf32>
    %c0_13 = arith.constant 0 : index
    %c0_14 = arith.constant 0 : index
    %c0_15 = arith.constant 0 : index
    %14 = vector.load %arg4[%c0_13, %c0_14, %c0_15] : memref<2x4x1xf32, #tpu.memory_space<vmem>>, vector<2x4x1xf32>
    tpu.vector_store %arg4[%c0_13, %c0_14, %c0_15], %13 {strides = array<i32>} : memref<2x4x1xf32, #tpu.memory_space<vmem>>, vector<2x4x1xf32>,
    return
  }
  func.func @transform_0(%arg0: i32, %arg1: i32) -> (i32, i32, i32) {
    %c0_i32 = arith.constant 0 : i32
    %c0_i32_0 = arith.constant 0 : i32
    return %arg0, %c0_i32, %arg1 : i32, i32, i32
  }
  func.func @transform_1(%arg0: i32, %arg1: i32) -> (i32, i32, i32) {
    %c0_i32 = arith.constant 0 : i32
    %c0_i32_0 = arith.constant 0 : i32
    %c0_i32_1 = arith.constant 0 : i32
    return %arg0, %c0_i32, %c0_i32_0 : i32, i32, i32
  }
  func.func @transform_2(%arg0: i32, %arg1: i32) -> (i32, i32, i32) {
    %c0_i32 = arith.constant 0 : i32
    %c0_i32_0 = arith.constant 0 : i32
    %c0_i32_1 = arith.constant 0 : i32
    return %arg0, %c0_i32, %c0_i32_0 : i32, i32, i32
  }
}

</mosaic_0001>

<bundles_post_ra>
// kernel: tpu_custom_call.1
= control target key start
LH: loop header
LB: loop body
LE: loop exit
PB: predicated region body
PF: predicated region fallthrough
CT: control target
= control target key end

     0   :  { %8 = vsyncpa [#allocation3], 0  ;;  %s122_s9 = smov [#allocation2]   ;;  %s205_s0 = inlined_call_operand.hbm [shape: f32[2,4,256], index: 0, kind: input, shape index: {}]   ;;  %s206_s1 = inlined_call_operand.vmem [shape: f32[2,4,1], index: 1, kind: output, shape index: {0}]   ;;  %s207_s2 = inlined_call_operand.vmem [shape: f32[2,4,1], index: 2, kind: output, shape index: {1}]  }
   0x1   :  { %s14_s10 = sshll.u32 %s122_s9, 4  ;;  %s98_s13 = scalar_lea.hbm %s205_s0, 256  ;;  %s15_s10 = int_to_ptr.vmem [resolvable:$true] %s14_s10 }
   0x2   :  { %p99_p0 = scmp.ne.s32.totalorder %s205_s0, %s98_s13  ;;  %p102_p1 = scmp.lt.u32.totalorder %s98_s13, %s205_s0 }
   0x4   :  { %p104_p2 = pnand %p102_p1, %p99_p0 }
   0x6   :  { %107 = shalt.err (!%p104_p2)
}
   0x7   :  { %s108_s18 = scalar_lea.vmem %s15_s10, 256  ;;  %p113_p4 = scmp.lt.s32.totalorder %s15_s10, %s15_s10 }
   0x8   :  { %p109_p3 = scmp.ne.s32.totalorder %s15_s10, %s108_s18  ;;  %p114_p5 = scmp.lt.s32.totalorder %s108_s18, %s108_s18 }
   0xa   :  { %p115_p6 = por %p114_p5, %p113_p4 }
   0xc   :  { %p116_p7 = pnand %p115_p6, %p109_p3 }
   0xe   :  { %119 = shalt.err (!%p116_p7)
}
   0xf   :  { %s123_s19 = smov 128   ;;  %s124_s20 = smov 8  }
  0x10   :  { %20 = dma.hbm_to_vmem [thread:$0]  %s205_s0, 256, %s15_s10, [#allocation3], %s123_s19, %s123_s19, %s124_s20  }
  0x11   :  { %120 = dma.done.wait [#allocation3], 256  }
  0x12   :  { %121 = vsyncadd [#allocation3], 4294967040  ;;  %vm28_vm0 = vcmask 3072   ;;  %v125_v0 = vmov 0.0   ;;  %vm43_vm1 = vcmask 1043456   ;;  %v33_v1 = vld [vmem:[#allocation2] sm:$0xff] }
  0x13   :  { %31 = vst.msk [vmem:[%s207_s2] sm:$0xf] %vm28_vm0, %v125_v0  ;;  %29 = vst.msk [vmem:[%s206_s1] sm:$0xf] %vm28_vm0, %v125_v0  ;;  %v34_v2 = vld [vmem:[#allocation2 + $0x8] sm:$0xff]  ;;  %v61_v3 = vmul.f32 %v33_v1, %v33_v1  ;;  %v39_v4 = vcombine.high %v33_v1, %v33_v1  ;;  %v44_v5 = vsel %vm43_vm1, %v33_v1, 0.0 }
  0x14   :  { %30 = vst.msk [vmem:[%s206_s1 + $0x4] sm:$0xf] %vm28_vm0, %v125_v0  ;;  %32 = vst.msk [vmem:[%s207_s2 + $0x4] sm:$0xf] %vm28_vm0, %v125_v0  ;;  %v62_v6 = vmul.f32 %v34_v2, %v34_v2  ;;  %v40_v7 = vcombine.high %v34_v2, %v34_v2  ;;  %v49_v8 = vsel %vm43_vm1, %v34_v2, 0.0 }
  0x15   :  { %v65_v9 = vcombine.high %v61_v3, %v61_v3  ;;  %v69_v10 = vsel %vm43_vm1, %v61_v3, 0.0  ;;  %v45_v11 = vsel %vm43_vm1, %v39_v4, 0.0 }
  0x16   :  { %v66_v12 = vcombine.high %v62_v6, %v62_v6  ;;  %v46_v13 = vadd.f32 %v45_v11, %v44_v5  ;;  %v50_v14 = vsel %vm43_vm1, %v40_v7, 0.0  ;;  %v74_v16 = vsel %vm43_vm1, %v62_v6, 0.0 }
  0x17   :  { %v70_v15 = vsel %vm43_vm1, %v65_v9, 0.0  ;;  %v51_v19 = vadd.f32 %v50_v14, %v49_v8 }
  0x18   :  { %v75_v17 = vsel %vm43_vm1, %v66_v12, 0.0  ;;  %v71_v18 = vadd.f32 %v70_v15, %v69_v10  ;;  %47 = vadd.xlane.f32.xlu0 %v46_v13 }
  0x19   :  { %v76_v20 = vadd.f32 %v75_v17, %v74_v16 }
  0x1a   :  { %72 = vadd.xlane.f32.xlu1 %v71_v18  ;;  %v35_v21 = vld [vmem:[%s206_s1] sm:$0xf] }
  0x1b   :  { %v59_v22 = vld [vmem:[%s207_s2] sm:$0xf]  ;;  %v36_v26 = vld [vmem:[%s206_s1 + $0x4] sm:$0xf] }
  0x1c   :  { %52 = vadd.xlane.f32.xlu0 %v51_v19  ;;  %v60_v28 = vld [vmem:[%s207_s2 + $0x4] sm:$0xf] }
  0x1e   :  { %77 = vadd.xlane.f32.xlu1 %v76_v20 }
  0xa5   :  { %v48_v23 = vpop.xlane.xlu0 %47 }
  0xa6   :  { %v54_v24 = vadd.f32 %v48_v23, %v35_v21 }
  0xa7   :  { %v73_v25 = vpop.xlane.xlu1 %72 }
  0xa8   :  { %v79_v27 = vadd.f32 %v73_v25, %v59_v22  ;;  %57 = vst.msk [vmem:[%s206_s1] sm:$0xf] %vm28_vm0, %v54_v24 }
  0xa9   :  { %v53_v29 = vpop.xlane.xlu0 %52 }
  0xaa   :  { %81 = vst.msk [vmem:[%s207_s2] sm:$0xf] %vm28_vm0, %v79_v27  ;;  %v55_v30 = vadd.f32 %v53_v29, %v36_v26 }
  0xab   :  { %v78_v31 = vpop.xlane.xlu1 %77 }
  0xac   :  { %v80_v32 = vadd.f32 %v78_v31, %v60_v28  ;;  %58 = vst.msk [vmem:[%s206_s1 + $0x4] sm:$0xf] %vm28_vm0, %v55_v30 }
  0xae   :  { %82 = vst.msk [vmem:[%s207_s2 + $0x4] sm:$0xf] %vm28_vm0, %v80_v32 }
  0xaf   :  { %91 = vsyncpa [#allocation3], 1 }

</bundles_post_ra>
